<compile_context>
chip_gen: v6e
topology: v6e:2x2x1
jax: 0.10.0
libtpu: 0.0.40
codegen_flags: <defaults>
</compile_context>

<pallas_src>
import functools

import jax
import jax.numpy as jnp
from jax import lax
from jax.experimental import pallas as pl
from jax.experimental.pallas import tpu as pltpu


def _focal_loss_kernel(logits_ref, targets_ref, out_ref, acc_ref, *,
                       gamma, eps, n_total, tile_rows, tiles_per_split,
                       needs_mask):
    i = pl.program_id(1)                       # reduction ("arbitrary") axis

    @pl.when(i == 0)
    def _init():
        acc_ref[...] = jnp.zeros_like(acc_ref)

    logits = logits_ref[...].astype(jnp.float32)               # (TN, C)
    tgt = targets_ref[...]                                     # (TN, 1) int32
    tn, c = logits.shape

    # Numerically stable log-sum-exp along the class (lane) axis.
    m = jnp.max(logits, axis=-1, keepdims=True)
    shifted = logits - m
    lse = jnp.log(jnp.sum(jnp.exp(shifted), axis=-1, keepdims=True))   # (TN,1)

    # Label-smoothed cross entropy folded into one weighted class reduction:
    #   ce = lse - [(1-eps)*shifted_y + (eps/C)*sum_j shifted_j]
    cls = lax.broadcasted_iota(jnp.int32, (tn, c), 1)
    w = jnp.where(cls == tgt, 1.0 - eps + eps / c, eps / c)
    ce = lse - jnp.sum(w * shifted, axis=-1, keepdims=True)            # (TN,1)

    # Focal weighting: (1 - pt)^gamma * ce with pt = exp(-ce).
    pt = jnp.exp(-ce)
    one_minus_pt = jnp.maximum(1.0 - pt, 0.0)
    if float(gamma).is_integer():
        focal_w = lax.integer_pow(one_minus_pt, int(gamma))    # VPU-only power
    else:
        focal_w = one_minus_pt ** gamma
    focal = focal_w * ce                                                # (TN,1)

    # Zero out rows of ragged / duplicated (clamped) tiles.  Static check: this
    # whole block disappears when the grid covers the batch exactly.
    if needs_mask:
        tile = pl.program_id(0) * tiles_per_split + i          # unclamped index
        row = tile * tile_rows + lax.broadcasted_iota(jnp.int32, (tn, 1), 0)
        focal = jnp.where(row < n_total, focal, 0.0)

    # Per-tile partial sum stays on the vector path (VMEM accumulator).
    acc_ref[...] += jnp.sum(focal, keepdims=True)

    @pl.when(i == pl.num_programs(1) - 1)
    def _finalize():
        out_ref[...] = acc_ref[...].reshape(1, 1, 1)


def _choose_tile_rows(n, c, itemsize, vmem_cap):
    """Logits tile height: ~2 MiB per block, dtype-aligned sublanes."""
    sub = max(8, 32 // max(1, itemsize))        # 8 f32 / 16 bf16 / 32 int8-fp8
    target_bytes = 2 << 20                      # ~2 MiB logits per block
    row_bytes = max(1, c * itemsize)
    # Never let double-buffered logits blocks swamp this generation's VMEM.
    max_block_bytes = max(sub * row_bytes, min(8 << 20, vmem_cap // 6))
    tn = target_bytes // row_bytes
    # Cap raised 1024 -> 4096; kept finite because (TN,1) per-row temporaries
    # are lane-padded 128x (review item 8).
    tn = min(int(tn), 4096)
    while tn > sub and tn * row_bytes > max_block_bytes:
        tn //= 2
    tn = max(sub, (tn // sub) * sub)
    if tn >= n:
        return n                                # one block covers the batch
    return tn


def focal_loss(logits, targets, gamma=2.0, label_smoothing=0.1):
    n, c = logits.shape
    itemsize = jnp.dtype(logits.dtype).itemsize

    try:
        vmem_cap = int(pltpu.get_tpu_info().vmem_capacity_bytes)
    except Exception:
        vmem_cap = 64 << 20                     # v7x-safe fallback

    tn = _choose_tile_rows(n, c, itemsize, vmem_cap)
    total_tiles = int(pl.cdiv(n, tn))

    # v7x dual-TC split: leading "parallel" axis of size 2; serializes on 1-TC.
    num_splits = 2 if total_tiles >= 2 else 1
    tiles_per_split = int(pl.cdiv(total_tiles, num_splits))
    needs_mask = (num_splits * tiles_per_split * tn != n)

    targets_2d = targets.astype(jnp.int32).reshape(n, 1)

    def tile_map(s, i):
        # Clamp so the (rare) extra tile of an uneven split stays in bounds;
        # its rows are masked out inside the kernel.
        return (jnp.minimum(s * tiles_per_split + i, total_tiles - 1), 0)

    kernel = functools.partial(
        _focal_loss_kernel,
        gamma=float(gamma), eps=float(label_smoothing),
        n_total=int(n), tile_rows=int(tn),
        tiles_per_split=int(tiles_per_split), needs_mask=bool(needs_mask))

    # Generation-aware VMEM budget: double-buffered inputs + in-kernel f32
    # temporaries ((tn,C) tiles and lane-padded (tn,1) row vectors) + headroom.
    logits_block = tn * c * itemsize
    tgt_block = tn * 128 * 4                    # (tn,1) int32 block, lane-padded
    tile_tmp = tn * c * 4                       # f32 (tn,C) temporaries
    row_tmp = tn * 128 * 4                      # f32 (tn,1) temporaries, padded
    needed = 2 * logits_block + 2 * tgt_block + 4 * tile_tmp + 4 * row_tmp \
        + (4 << 20)
    vmem_limit = int(max(16 << 20, min(needed, (vmem_cap * 3) // 4)))

    cost = pl.CostEstimate(
        flops=6 * n * c,
        transcendentals=n * c + 3 * n,
        bytes_accessed=n * c * itemsize + n * 4 + num_splits * 4)

    partials = pl.pallas_call(
        kernel,
        out_shape=jax.ShapeDtypeStruct((num_splits, 1, 1), jnp.float32),
        grid_spec=pltpu.PrefetchScalarGridSpec(
            num_scalar_prefetch=0,
            grid=(num_splits, tiles_per_split),
            in_specs=[
                pl.BlockSpec((tn, c), tile_map),   # logits tile (VMEM)
                pl.BlockSpec((tn, 1), tile_map),   # targets tile (VMEM)
            ],
            out_specs=pl.BlockSpec((1, 1, 1), lambda s, i: (s, 0, 0)),
            scratch_shapes=[pltpu.VMEM((1, 1), jnp.float32)],
        ),
        compiler_params=pltpu.CompilerParams(
            # Leading split axis is independent (megacore); trailing axis
            # carries the running-sum accumulator.
            dimension_semantics=("parallel", "arbitrary"),
            vmem_limit_bytes=vmem_limit,
        ),
        cost_estimate=cost,
    )(logits, targets_2d)

    return jnp.sum(partials) / n


def _focal_loss_reference(logits, targets, gamma=2.0, label_smoothing=0.1):
    # Pure-JAX reference matching F.cross_entropy(label_smoothing=0.1) + focal.
    logp = jax.nn.log_softmax(logits.astype(jnp.float32), axis=-1)
    nll = -jnp.take_along_axis(logp, targets[:, None].astype(jnp.int32),
                               axis=-1)[:, 0]
    smooth = -jnp.mean(logp, axis=-1)
    ce = (1.0 - label_smoothing) * nll + label_smoothing * smooth
    pt = jnp.exp(-ce)
    return jnp.mean(((1.0 - pt) ** gamma) * ce)


if __name__ == "__main__":
    key = jax.random.PRNGKey(0)
    k1, k2 = jax.random.split(key)

    N, C = 8, 32  # batch of 8 samples, 32 classes
    logits = jax.random.normal(k1, (N, C), dtype=jnp.float32)
    targets = jax.random.randint(k2, (N,), 0, C, dtype=jnp.int32)

    loss = focal_loss(logits, targets, gamma=2.0, label_smoothing=0.1)
    loss = jax.block_until_ready(loss)

    ref = _focal_loss_reference(logits, targets, gamma=2.0, label_smoothing=0.1)
    assert jnp.allclose(loss, ref, rtol=1e-5, atol=1e-5), (loss, ref)

    print("KERNEL_OK")
</pallas_src>

<mosaic_0001>
module attributes {stable_mosaic.version = 11 : i64} {
  func.func @_focal_loss_kernel(%arg0: i32, %arg1: i32, %arg2: memref<8x32xf32, #tpu.memory_space<vmem>>, %arg3: memref<8x1xi32, #tpu.memory_space<vmem>>, %arg4: memref<1x1x1xf32, #tpu.memory_space<vmem>>, %arg5: memref<1x1xf32, #tpu.memory_space<vmem>>) attributes {dimension_semantics = [#tpu.dimension_semantics<parallel>, #tpu.dimension_semantics<arbitrary>], iteration_bounds = array<i64: 1, 1>, scalar_prefetch = 0 : i64, scratch_operands = 1 : i64, tpu.core_type = #tpu.core_type<tc>, window_params = [{transform_indices = @transform_0, window_bounds = array<i64: 8, 32>}, {transform_indices = @transform_1, window_bounds = array<i64: 8, 1>}, {transform_indices = @transform_2, window_bounds = array<i64: 1, 1, 1>}]} {
    %c0_i32 = arith.constant 0 : i32
    %0 = arith.cmpi eq, %arg1, %c0_i32 : i32
    %1 = arith.extui %0 : i1 to i32
    %c0_i32_0 = arith.constant 0 : i32
    %2 = arith.cmpi ne, %1, %c0_i32_0 : i32
    scf.if %2 {
      %cst_18 = arith.constant 0.000000e+00 : f32
      %43 = vector.broadcast %cst_18 : f32 to vector<1x1xf32>
      %c0_19 = arith.constant 0 : index
      %c0_20 = arith.constant 0 : index
      %44 = vector.load %arg5[%c0_19, %c0_20] : memref<1x1xf32, #tpu.memory_space<vmem>>, vector<1x1xf32>
      tpu.vector_store %arg5[%c0_19, %c0_20], %43 {strides = array<i32>} : memref<1x1xf32, #tpu.memory_space<vmem>>, vector<1x1xf32>,
    } else {
    }
    %c0 = arith.constant 0 : index
    %c0_1 = arith.constant 0 : index
    %3 = vector.load %arg2[%c0, %c0_1] : memref<8x32xf32, #tpu.memory_space<vmem>>, vector<8x32xf32>
    %c0_2 = arith.constant 0 : index
    %c0_3 = arith.constant 0 : index
    %4 = vector.load %arg3[%c0_2, %c0_3] : memref<8x1xi32, #tpu.memory_space<vmem>>, vector<8x1xi32>
    %cst = arith.constant dense<0xFF800000> : vector<8xf32>
    %5 = vector.multi_reduction <maximumf>, %3, %cst [1] : vector<8x32xf32> to vector<8xf32>
    %6 = vector.shape_cast %5 : vector<8xf32> to vector<8x1xf32>
    %7 = vector.broadcast %6 : vector<8x1xf32> to vector<8x32xf32>
    %8 = arith.subf %3, %7 : vector<8x32xf32>
    %9 = math.exp %8 : vector<8x32xf32>
    %cst_4 = arith.constant dense<0.000000e+00> : vector<8xf32>
    %10 = vector.multi_reduction <add>, %9, %cst_4 [1] : vector<8x32xf32> to vector<8xf32>
    %11 = vector.shape_cast %10 : vector<8xf32> to vector<8x1xf32>
    %12 = math.log %11 : vector<8x1xf32>
    %13 = tpu.iota {dimensions = array<i32: 1>} : vector<8x32xi32>
    %14 = vector.broadcast %4 : vector<8x1xi32> to vector<8x32xi32>
    %15 = arith.cmpi eq, %13, %14 : vector<8x32xi32>
    %cst_5 = arith.constant 0.903124988 : f32
    %cst_6 = arith.constant 3.125000e-03 : f32
    %16 = vector.broadcast %cst_5 : f32 to vector<8x32xf32>
    %17 = vector.broadcast %cst_6 : f32 to vector<8x32xf32>
    %18 = arith.select %15, %16, %17 : vector<8x32xi1>, vector<8x32xf32>
    %19 = arith.mulf %18, %8 : vector<8x32xf32>
    %cst_7 = arith.constant dense<0.000000e+00> : vector<8xf32>
    %20 = vector.multi_reduction <add>, %19, %cst_7 [1] : vector<8x32xf32> to vector<8xf32>
    %21 = vector.shape_cast %20 : vector<8xf32> to vector<8x1xf32>
    %22 = arith.subf %12, %21 : vector<8x1xf32>
    %cst_8 = arith.constant 0.000000e+00 : f32
    %23 = vector.broadcast %cst_8 : f32 to vector<8x1xf32>
    %24 = arith.subf %23, %22 : vector<8x1xf32>
    %25 = math.exp %24 : vector<8x1xf32>
    %cst_9 = arith.constant 1.000000e+00 : f32
    %26 = vector.broadcast %cst_9 : f32 to vector<8x1xf32>
    %27 = arith.subf %26, %25 : vector<8x1xf32>
    %cst_10 = arith.constant 0.000000e+00 : f32
    %28 = vector.broadcast %cst_10 : f32 to vector<8x1xf32>
    %29 = arith.maximumf %27, %28 : vector<8x1xf32>
    %30 = arith.mulf %29, %29 : vector<8x1xf32>
    %31 = arith.mulf %30, %22 : vector<8x1xf32>
    %c0_11 = arith.constant 0 : index
    %c0_12 = arith.constant 0 : index
    %32 = vector.load %arg5[%c0_11, %c0_12] : memref<1x1xf32, #tpu.memory_space<vmem>>, vector<1x1xf32>
    %33 = vector.shape_cast %31 : vector<8x1xf32> to vector<1x8x1xf32>
    %cst_13 = arith.constant dense<0.000000e+00> : vector<1xf32>
    %34 = vector.multi_reduction <add>, %33, %cst_13 [1, 2] : vector<1x8x1xf32> to vector<1xf32>
    %35 = vector.shape_cast %34 : vector<1xf32> to vector<1x1x1xf32>
    %36 = vector.extract %35[0, 0, 0] : f32 from vector<1x1x1xf32>
    %37 = vector.broadcast %36 : f32 to vector<1x1xf32>
    %38 = arith.addf %32, %37 : vector<1x1xf32>
    %c0_14 = arith.constant 0 : index
    %c0_15 = arith.constant 0 : index
    %39 = vector.load %arg5[%c0_14, %c0_15] : memref<1x1xf32, #tpu.memory_space<vmem>>, vector<1x1xf32>
    tpu.vector_store %arg5[%c0_14, %c0_15], %38 {strides = array<i32>} : memref<1x1xf32, #tpu.memory_space<vmem>>, vector<1x1xf32>,
    %c0_i32_16 = arith.constant 0 : i32
    %40 = arith.cmpi eq, %arg1, %c0_i32_16 : i32
    %41 = arith.extui %40 : i1 to i32
    %c0_i32_17 = arith.constant 0 : i32
    %42 = arith.cmpi ne, %41, %c0_i32_17 : i32
    scf.if %42 {
      %c0_18 = arith.constant 0 : index
      %c0_19 = arith.constant 0 : index
      %43 = vector.load %arg5[%c0_18, %c0_19] : memref<1x1xf32, #tpu.memory_space<vmem>>, vector<1x1xf32>
      %44 = vector.shape_cast %43 : vector<1x1xf32> to vector<1x1x1xf32>
      %c0_20 = arith.constant 0 : index
      %c0_21 = arith.constant 0 : index
      %c0_22 = arith.constant 0 : index
      %45 = vector.load %arg4[%c0_20, %c0_21, %c0_22] : memref<1x1x1xf32, #tpu.memory_space<vmem>>, vector<1x1x1xf32>
      tpu.vector_store %arg4[%c0_20, %c0_21, %c0_22], %44 {strides = array<i32>} : memref<1x1x1xf32, #tpu.memory_space<vmem>>, vector<1x1x1xf32>,
    } else {
    }
    return
  }
  func.func @transform_0(%arg0: i32, %arg1: i32) -> (i32, i32) {
    %c1_i32 = arith.constant 1 : i32
    %0 = arith.muli %arg0, %c1_i32 : i32
    %1 = arith.addi %0, %arg1 : i32
    %c0_i32 = arith.constant 0 : i32
    %2 = arith.minsi %1, %c0_i32 : i32
    %c0_i32_0 = arith.constant 0 : i32
    %c0_i32_1 = arith.constant 0 : i32
    return %2, %c0_i32_0 : i32, i32
  }
  func.func @transform_1(%arg0: i32, %arg1: i32) -> (i32, i32) {
    %c1_i32 = arith.constant 1 : i32
    %0 = arith.muli %arg0, %c1_i32 : i32
    %1 = arith.addi %0, %arg1 : i32
    %c0_i32 = arith.constant 0 : i32
    %2 = arith.minsi %1, %c0_i32 : i32
    %c0_i32_0 = arith.constant 0 : i32
    %c0_i32_1 = arith.constant 0 : i32
    return %2, %c0_i32_0 : i32, i32
  }
  func.func @transform_2(%arg0: i32, %arg1: i32) -> (i32, i32, i32) {
    %c0_i32 = arith.constant 0 : i32
    %c0_i32_0 = arith.constant 0 : i32
    %c0_i32_1 = arith.constant 0 : i32
    return %arg0, %c0_i32, %c0_i32_0 : i32, i32, i32
  }
}

</mosaic_0001>

<bundles_post_ra>
// kernel: tpu_custom_call.1
= control target key start
LH: loop header
LB: loop body
LE: loop exit
PB: predicated region body
PF: predicated region fallthrough
CT: control target
= control target key end

     0   :  { %vm74_vm0 = vcmask 261120   ;;  %s221_s0 = inlined_call_operand.vmem [shape: f32[8,32], index: 0, kind: input, shape index: {}]   ;;  %s222_s1 = inlined_call_operand.vmem [shape: s32[8,1], index: 1, kind: input, shape index: {}]   ;;  %s223_s2 = inlined_call_operand.hbm [shape: f32[1,1,1], index: 2, kind: output, shape index: {}]  }
   0x1   :  { %v72_v0 = vld [vmem:[%s221_s0] sm:$0xff] }
   0x2   :  { %7 = vsyncpa [#allocation4], 0  ;;  %v75_v1 = vsel %vm74_vm0, %v72_v0, -inf  ;;  %v187_v2 = vmov 0   ;;  %v73_v3 = vld [vmem:[%s222_s1] sm:$0xff]  ;;  %v86_v7 = vlaneseq  ;;  %vm106_vm2 = vcmask 7168  }
   0x3   :  { %158 = vset.pattern.permute.xlu0 %v187_v2  ;;  %v188_v10 = vmov 0.003125   ;;  %vm70_vm3 = vcmask 0   ;;  %v189_v29 = vmov 0.0   ;;  %s190_s1 = smov [#allocation3]  }
   0x4   :  { %76 = vmax.xlane.f32.xlu0 %v75_v1  ;;  %v87_v8 = vand.u32 127, %v86_v7  ;;  %71 = vst.msk [vmem:[#allocation2] sm:$0x1] %vm70_vm3, %v189_v29  ;;  %s132_s13 = sshll.u32 %s190_s1, 4  ;;  %s133_s13 = int_to_ptr.vmem [resolvable:$true] %s132_s13 }
   0x5   :  { %s165_s14 = scalar_lea.vmem %s133_s13, 16  ;;  %s169_s15 = scalar_lea.vmem %s133_s13, 32 }
   0x6   :  { %p166_p0 = scmp.ne.s32.totalorder %s133_s13, %s165_s14  ;;  %p170_p1 = scmp.lt.s32.totalorder %s133_s13, %s133_s13 }
   0x7   :  { %p171_p2 = scmp.lt.s32.totalorder %s169_s15, %s165_s14 }
   0x9   :  { %p172_p3 = por %p171_p2, %p170_p1 }
   0xb   :  { %v105_v37 = vld [vmem:[#allocation2] sm:$0x1]  ;;  %p173_p4 = pnand %p172_p3, %p166_p0 }
  0x1a   :  { %89 = vperm.xlu0 %158, %v73_v3  }
  0x8d   :  { %v77_v4 = vpop.xlane.xlu0 %76 }
  0x8e   :  { %v78_v5 = vsub.f32 %v72_v0, %v77_v4 }
  0x90   :  { %v79_v6 = vmul.f32 1.442695, %v78_v5 }
  0x92   :  { %159 = vpow2.f32 %v79_v6 }
  0x95   :  { %v90_v9 = vpop.permute.xlu0 %89 }
  0x96   :  { %vm91_vm1 = vcmp.eq.s32.totalorder %v87_v8, %v90_v9 }
  0x97   :  { %v92_v11 = vsel %vm91_vm1, 0.903125, %v188_v10 }
  0x98   :  { %v93_v14 = vmul.f32 %v92_v11, %v78_v5 }
  0x9a   :  { %v94_v15 = vsel %vm74_vm0, %v93_v14, 0.0 }
  0x9f   :  { %v160_v12 = vpop.eup %159 }
  0xa0   :  { %v81_v13 = vsel %vm74_vm0, %v160_v12, 0.0 }
  0xa1   :  { %82 = vadd.xlane.f32.xlu1 %v81_v13 }
  0xa5   :  { %95 = vadd.xlane.f32.xlu1 %v94_v15 }
 0x12a   :  { %v83_v16 = vpop.xlane.xlu1 %82 }
 0x12b   :  { %161 = vlog2.f32 %v83_v16 }
 0x12e   :  { %v96_v19 = vpop.xlane.xlu1 %95 }
 0x138   :  { %v162_v17 = vpop.eup %161 }
 0x139   :  { %v85_v18 = vmul.f32 0.6931472, %v162_v17 }
 0x13b   :  { %v97_v20 = vsub.f32 %v85_v18, %v96_v19 }
 0x13d   :  { %v98_v21 = vsub.f32 0.0, %v97_v20 }
 0x13f   :  { %v99_v22 = vmul.f32 1.442695, %v98_v21 }
 0x141   :  { %163 = vpow2.f32 %v99_v22 }
 0x14e   :  { %v164_v23 = vpop.eup %163 }
 0x14f   :  { %v101_v24 = vsub.f32 1.0, %v164_v23 }
 0x151   :  { %v102_v25 = vmax.f32 %v101_v24, 0.0 }
 0x153   :  { %v103_v26 = vmul.f32 %v102_v25, %v102_v25 }
 0x155   :  { %v104_v27 = vmul.f32 %v103_v26, %v97_v20 }
 0x157   :  { %v107_v28 = vsel %vm106_vm2, %v104_v27, 0.0 }
 0x158   :  { %108 = vadd.xlane.f32.xlu1 %v107_v28 }
 0x1e1   :  { %v109_v30 = vpop.xlane.xlu1 %108 }
 0x1e2   :  { %v110_v31 = vrot.slane %v109_v30, 4 }
 0x1e4   :  { %v111_v32 = vadd.f32 %v110_v31, %v109_v30 }
 0x1e6   :  { %v112_v33 = vrot.slane %v111_v32, 2 }
 0x1e8   :  { %v113_v34 = vadd.f32 %v112_v33, %v111_v32 }
 0x1ea   :  { %v114_v35 = vrot.slane %v113_v34, 1 }
 0x1ec   :  { %v115_v36 = vadd.f32 %v114_v35, %v113_v34 }
 0x1ee   :  { %152 = vpush %v115_v36 }
 0x21f   :  { %s153_s0 = spop %152 }
 0x220   :  { %v117_v38 = vstv %s153_s0 }
 0x221   :  { %v118_v39 = vadd.f32 %v117_v38, %v105_v37 }
 0x223   :  { %120 = vst.msk [vmem:[#allocation2] sm:$0x1] %vm70_vm3, %v118_v39 }
 0x22a   :  { %v124_v40 = vld [vmem:[#allocation2] sm:$0x1] }
 0x22b   :  { %125 = vst.msk [vmem:[#allocation3] sm:$0x1] %vm70_vm3, %v124_v40 }
 0x22c   :  { %176 = shalt.err (!%p173_p4)
}
 0x22d   :  { %135 = dma.vmem_to_hbm [thread:$0]  %s133_s13, 16, %s223_s2, [#allocation4]  }
 0x22e   :  { %185 = dma.done.wait [#allocation4], 16  }
 0x22f   :  { %186 = vsyncadd [#allocation4], 4294967280 }
 0x230   :  { %139 = vsyncpa [#allocation4], 1 }

</bundles_post_ra>
